<compile_context>
chip_gen: v5e
topology: v5e:2x2
jax: 0.10.0
libtpu: 0.0.40
codegen_flags: <defaults>
</compile_context>

<pallas_src>
import jax
import jax.numpy as jnp
from jax.experimental import pallas as pl
from jax.experimental.pallas import tpu as pltpu


def none_junction_forward(y, x=None):
    """NoneJunction.forward: return `y` unchanged. `x` is ignored.

    Optimal production path: no HBM read/write round trip at all.
    """
    del x
    return y


def _make_dma_copy_kernel(n_chunks, chunk_rows):
    """Build an HBM->HBM DMA copy kernel with `n_chunks` parallel DMAs."""

    def kernel(y_hbm, o_hbm, sem):
        if n_chunks == 1:
            cp = pltpu.make_async_copy(y_hbm, o_hbm, sem)
            cp.start()
            cp.wait()
        else:
            copies = []
            for c in range(n_chunks):
                start = c * chunk_rows
                cp = pltpu.make_async_copy(
                    y_hbm.at[pl.ds(start, chunk_rows)],
                    o_hbm.at[pl.ds(start, chunk_rows)],
                    sem.at[c],
                )
                cp.start()
                copies.append(cp)
            for cp in copies:
                cp.wait()

    return kernel


def _pick_chunks(y):
    """Static choice of how many leading-axis chunks to DMA (1, 2, or 4)."""
    nbytes = y.size * jnp.dtype(y.dtype).itemsize
    if y.ndim == 0 or y.shape[0] == 0:
        return 1, 0
    rows = y.shape[0]
    if nbytes >= (4 << 20) and rows % 4 == 0:
        return 4, rows // 4
    if nbytes >= (2 << 20) and rows % 2 == 0:
        return 2, rows // 2
    return 1, rows


def none_junction_forward_copy(y, x=None):
    """Same semantics as NoneJunction.forward, but returns a freshly
    materialized (non-aliased) buffer via a direct HBM->HBM DMA."""
    del x
    if y.size == 0:
        # Nothing to copy; return a fresh (empty) buffer to preserve the
        # non-aliasing contract.
        return jnp.zeros_like(y)

    n_chunks, chunk_rows = _pick_chunks(y)
    nbytes = y.size * jnp.dtype(y.dtype).itemsize

    if n_chunks == 1:
        sem_spec = pltpu.SemaphoreType.DMA(())
    else:
        sem_spec = pltpu.SemaphoreType.DMA((n_chunks,))

    out = pl.pallas_call(
        _make_dma_copy_kernel(n_chunks, chunk_rows),
        out_shape=jax.ShapeDtypeStruct(y.shape, y.dtype),
        in_specs=[pl.BlockSpec(memory_space=pl.ANY)],
        out_specs=pl.BlockSpec(memory_space=pl.ANY),
        scratch_shapes=[sem_spec],
        cost_estimate=pl.CostEstimate(
            flops=0, transcendentals=0, bytes_accessed=2 * nbytes),
    )(y)
    return out


if __name__ == "__main__":
    key = jax.random.PRNGKey(0)
    # Shapes consistent with a junction operating on conv feature maps (NCHW).
    N, C, H, W = 2, 4, 16, 16
    ky, kx, kz = jax.random.split(key, 3)
    y = jax.random.normal(ky, (N, C, H, W), dtype=jnp.float32)
    # Auxiliary list `x` — ignored by NoneJunction, provided for API parity.
    x = [jax.random.normal(kx, (N, C, H, W), dtype=jnp.float32)]

    # Production path: true identity, zero HBM traffic.
    out_fast = jax.block_until_ready(none_junction_forward(y, x))
    assert out_fast.shape == y.shape and out_fast.dtype == y.dtype
    assert bool(jnp.all(out_fast == y))

    # Pallas copy path: single flat HBM->HBM DMA (small array, no chunking).
    out_copy = jax.block_until_ready(none_junction_forward_copy(y, x))
    assert out_copy.shape == y.shape and out_copy.dtype == y.dtype
    assert bool(jnp.all(out_copy == y))

    # Larger, awkwardly-shaped array (last dim 513, not a multiple of 128;
    # ~4.2 MiB) exercises the chunked-DMA path with no padding or tiling needed.
    y_big = jax.random.normal(kz, (8, 256, 513), dtype=jnp.float32)
    out_big = jax.block_until_ready(none_junction_forward_copy(y_big))
    assert out_big.shape == y_big.shape and out_big.dtype == y_big.dtype
    assert bool(jnp.all(out_big == y_big))

    print("KERNEL_OK")
</pallas_src>

<mosaic_0001>
module attributes {stable_mosaic.version = 11 : i64} {
  func.func @kernel(%arg0: memref<2x4x16x16xf32, #tpu.memory_space<any>>, %arg1: memref<2x4x16x16xf32, #tpu.memory_space<any>>, %arg2: memref<!tpu.dma_semaphore, #tpu.memory_space<semaphore_mem>>) attributes {dimension_semantics = [], scalar_prefetch = 0 : i64, scratch_operands = 1 : i64, tpu.core_type = #tpu.core_type<tc>} {
    tpu.enqueue_dma source(%arg0 : memref<2x4x16x16xf32, #tpu.memory_space<any>>) target(%arg1 : memref<2x4x16x16xf32, #tpu.memory_space<any>>) target_semaphore(%arg2 : memref<!tpu.dma_semaphore, #tpu.memory_space<semaphore_mem>>)
    tpu.wait_dma2 semaphore(%arg2 : memref<!tpu.dma_semaphore, #tpu.memory_space<semaphore_mem>>) src(%arg0 : memref<2x4x16x16xf32, #tpu.memory_space<any>>) dst(%arg1 : memref<2x4x16x16xf32, #tpu.memory_space<any>>)
    return
  }
}

</mosaic_0001>

<bundles_post_ra>
// kernel: tpu_custom_call.1
= control target key start
LH: loop header
LB: loop body
LE: loop exit
PB: predicated region body
PF: predicated region fallthrough
CT: control target
= control target key end

     0   :  { %s34_s12 = smov [#allocation2]   ;;  %s35_s13 = smov [#allocation3]   ;;  %s53_s0 = inlined_call_operand.hbm [shape: f32[2,4,16,16], index: 0, kind: input, shape index: {}]   ;;  %s54_s1 = inlined_call_operand.hbm [shape: f32[2,4,16,16], index: 1, kind: output, shape index: {}]  }
   0x1   :  { %s10_s8 = sshll.u32 %s53_s0, 4  ;;  %s12_s11 = sshll.u32 %s54_s1, 4  ;;  %s11_s8 = int_to_ptr.hbm [resolvable:$true] %s10_s8  ;;  %s13_s11 = int_to_ptr.hbm [resolvable:$true] %s12_s11 }
   0x2   :  { %s36_s14 = smov 0  }
   0x3   :  { %16 = dma.general %s11_s8, 2048, %s13_s11, %s34_s12, %s35_s13, [#allocation4], %s36_s14, 0  }
   0x4   :  { %32 = dma.done.wait [#allocation2], 2048 }
   0x5   :  { %33 = vsyncadd [#allocation2], 4294965248 }
   0x6   :  { %22 = vsyncmov [#allocation2] }
   0x9   :  { %s23_s15 = vpop.sfrf %22 }
   0xa   :  { %p28_p0 = scmp.ne.s32.totalorder %s23_s15, 0 }
   0xc   :  { %27 = shalt.err (%p28_p0)  }

</bundles_post_ra>
